<compile_context>
chip_gen: v6e
topology: v6e:2x2x1
jax: 0.10.0
libtpu: 0.0.40
codegen_flags: <defaults>
</compile_context>

<pallas_src>
import functools

import jax
import jax.numpy as jnp
from jax import lax
from jax.experimental import pallas as pl
from jax.experimental.pallas import tpu as pltpu

EPS = 1e-5


def _round_up(x, m):
    return (x + m - 1) // m * m


def _make_fused_kernel(n, cin, cout, kh, kw, wp, ow, ly, lyp, count):
    """Fused ConvTranspose2d + BatchNorm2d(training stats) + ReLU kernel."""
    khkw = kh * kw

    def kernel(x_ref, w_ref, b_ref, g_ref, be_ref, o_ref, xcol_ref):
        # ---- Phase 1: conv-transpose as one K = KH*KW*Cin matmul per batch elem.
        ys = []
        for ni in range(n):
            # Build the im2col slab in VMEM: row block `tap` holds the input
            # shifted by t = a*Wp + b lanes (f32 scratch -> tile-aligned stores).
            for tap in range(khkw):
                a, b = divmod(tap, kw)
                t = a * wp + b
                xcol_ref[tap * cin:(tap + 1) * cin, :] = (
                    x_ref[ni, :, t:t + lyp].astype(jnp.float32))
            y = jnp.dot(w_ref[...], xcol_ref[...].astype(jnp.bfloat16),
                        preferred_element_type=jnp.float32)          # [Cout, LYP]
            ys.append(y + b_ref[...])                                  # + conv bias

        # ---- Phase 2: training-mode BN statistics over (N, OH, OW).
        col = lax.broadcasted_iota(jnp.int32, (1, lyp), 1)
        maskf = (((col % wp) < ow) & (col < ly)).astype(jnp.float32)   # drop phantoms
        inv_count = 1.0 / count

        total = ys[0] * maskf
        for ni in range(1, n):
            total = total + ys[ni] * maskf
        mean = jnp.sum(total, axis=1, keepdims=True) * inv_count      # [Cout, 1]

        var_sum = None
        for ni in range(n):
            d = (ys[ni] - mean) * maskf
            v = jnp.sum(d * d, axis=1, keepdims=True)
            var_sum = v if var_sum is None else var_sum + v
        var = var_sum * inv_count                                      # biased var

        inv_std = lax.rsqrt(var + EPS)
        scale = g_ref[...] * inv_std                                   # [Cout, 1]
        shift = be_ref[...] - mean * scale

        # ---- Phase 3: fused BN affine + ReLU; lane-dense [Cout, LYP] stores.
        for ni in range(n):
            o_ref[ni] = jnp.maximum(ys[ni] * scale + shift, 0.0)

    return kernel


@functools.partial(jax.jit, static_argnames=("stride", "padding", "output_padding"))
def decoder_conv_block(x, weight, bias, gamma, beta, *, stride, padding, output_padding):
    """Forward pass of DecoderConvBlock.
    x: [N, Cin, H, W] (NCHW); weight: ConvTranspose2d layout [Cin, Cout, KH, KW]."""
    n, cin, h, w = x.shape
    cin_w, cout, kh, kw = weight.shape
    assert cin_w == cin

    pad_lo_h = kh - 1 - padding
    pad_hi_h = kh - 1 - padding + output_padding
    pad_lo_w = kw - 1 - padding
    pad_hi_w = kw - 1 - padding + output_padding
    assert min(pad_lo_h, pad_lo_w) >= 0, "padding > kernel_size - 1 not supported"

    oh = (h - 1) * stride - 2 * padding + kh + output_padding
    ow = (w - 1) * stride - 2 * padding + kw + output_padding

    # Direct-conv-equivalent weight (flip spatially, swap in/out channels), then
    # flatten so w_mat[co, tap*Cin + ci] matches the im2col row order (tap, ci).
    w_eq = jnp.flip(weight, axis=(2, 3)).transpose(1, 0, 2, 3)         # [Cout,Cin,KH,KW]
    w_mat = w_eq.transpose(0, 2, 3, 1).reshape(cout, kh * kw * cin).astype(jnp.bfloat16)

    # Zero-inserted (stride) + asymmetrically padded input in one lax.pad.
    xb = x.astype(jnp.bfloat16)
    zero = jnp.array(0, dtype=xb.dtype)
    xp = lax.pad(xb, zero, ((0, 0, 0), (0, 0, 0),
                            (pad_lo_h, pad_hi_h, stride - 1),
                            (pad_lo_w, pad_hi_w, stride - 1)))
    hp, wp = xp.shape[2], xp.shape[3]
    assert oh == hp - kh + 1 and ow == wp - kw + 1

    # Flatten spatial dims.  LY = OH*Wp (valid cols interleaved with Wp-OW phantom
    # cols per row); pad the store width up to a lane-dense multiple of 128.
    ly = oh * wp
    lyp = _round_up(ly, 128)
    t_max = (kh - 1) * wp + (kw - 1)
    lx = _round_up(max(hp * wp, lyp + t_max), 128)
    x_flat = xp.reshape(n, cin, hp * wp)
    x_flat = jnp.pad(x_flat, ((0, 0), (0, 0), (0, lx - hp * wp)))

    bias_col = bias.astype(jnp.float32).reshape(cout, 1)
    gamma_col = gamma.astype(jnp.float32).reshape(cout, 1)
    beta_col = beta.astype(jnp.float32).reshape(cout, 1)
    count = float(n * oh * ow)

    y = pl.pallas_call(
        _make_fused_kernel(n, cin, cout, kh, kw, wp, ow, ly, lyp, count),
        out_shape=jax.ShapeDtypeStruct((n, cout, lyp), jnp.float32),
        grid=(1,),
        in_specs=[
            pl.BlockSpec((n, cin, lx), lambda i: (0, 0, 0)),
            pl.BlockSpec((cout, kh * kw * cin), lambda i: (0, 0)),
            pl.BlockSpec((cout, 1), lambda i: (0, 0)),
            pl.BlockSpec((cout, 1), lambda i: (0, 0)),
            pl.BlockSpec((cout, 1), lambda i: (0, 0)),
        ],
        out_specs=pl.BlockSpec((n, cout, lyp), lambda i: (0, 0, 0)),
        scratch_shapes=[pltpu.VMEM((kh * kw * cin, lyp), jnp.float32)],
        compiler_params=pltpu.CompilerParams(
            dimension_semantics=("arbitrary",),
            vmem_limit_bytes=32 * 1024 * 1024),
    )(x_flat, w_mat, bias_col, gamma_col, beta_col)

    # Drop lane padding + phantom columns; assemble NCHW output (cheap XLA ops).
    out = y[:, :, :ly].reshape(n, cout, oh, wp)[..., :ow]
    return out


def reference(x, weight, bias, gamma, beta, *, stride, padding, output_padding):
    """Plain-JAX reference matching the PyTorch forward (training-mode BN)."""
    cin, cout, kh, kw = weight.shape
    w_eq = jnp.flip(weight, axis=(2, 3)).transpose(1, 0, 2, 3)
    y = lax.conv_general_dilated(
        x, w_eq, window_strides=(1, 1),
        padding=((kh - 1 - padding, kh - 1 - padding + output_padding),
                 (kw - 1 - padding, kw - 1 - padding + output_padding)),
        lhs_dilation=(stride, stride),
        dimension_numbers=("NCHW", "OIHW", "NCHW"),
        preferred_element_type=jnp.float32,
    ) + bias.reshape(1, -1, 1, 1)
    mean = jnp.mean(y, axis=(0, 2, 3), keepdims=True)
    var = jnp.mean((y - mean) ** 2, axis=(0, 2, 3), keepdims=True)
    yn = (y - mean) * lax.rsqrt(var + EPS)
    yn = yn * gamma.reshape(1, -1, 1, 1) + beta.reshape(1, -1, 1, 1)
    return jnp.maximum(yn, 0.0)


if __name__ == "__main__":
    # DecoderConvBlock(in_channels=8, out_channels=4, kernel_size=3,
    #                  stride=2, padding=1, output_padding=1)  ->  2x upsample
    N, CIN, H, W = 2, 8, 8, 8
    COUT, KH, KW = 4, 3, 3
    STRIDE, PAD, OUT_PAD = 2, 1, 1

    key = jax.random.PRNGKey(0)
    kx, kw_, kb, kg, kbe = jax.random.split(key, 5)
    x = jax.random.normal(kx, (N, CIN, H, W), dtype=jnp.float32)
    # ConvTranspose2d weight layout: [Cin, Cout, KH, KW]
    weight = jax.random.normal(kw_, (CIN, COUT, KH, KW), dtype=jnp.float32) * 0.1
    bias = jax.random.normal(kb, (COUT,), dtype=jnp.float32) * 0.1
    gamma = jnp.ones((COUT,), dtype=jnp.float32) + 0.1 * jax.random.normal(kg, (COUT,))
    beta = 0.1 * jax.random.normal(kbe, (COUT,), dtype=jnp.float32)

    out = decoder_conv_block(x, weight, bias, gamma, beta,
                             stride=STRIDE, padding=PAD, output_padding=OUT_PAD)
    out = jax.block_until_ready(out)

    ref = reference(x, weight, bias, gamma, beta,
                    stride=STRIDE, padding=PAD, output_padding=OUT_PAD)
    OH = (H - 1) * STRIDE - 2 * PAD + KH + OUT_PAD
    OW = (W - 1) * STRIDE - 2 * PAD + KW + OUT_PAD
    assert out.shape == (N, COUT, OH, OW)
    assert jnp.allclose(out, ref, atol=3e-2, rtol=3e-2), float(jnp.max(jnp.abs(out - ref)))

    print("KERNEL_OK")
</pallas_src>

<mosaic_0001>
module attributes {stable_mosaic.version = 11 : i64} {
  func.func @kernel(%arg0: i32, %arg1: memref<2x8x512xbf16, #tpu.memory_space<vmem>>, %arg2: memref<4x72xbf16, #tpu.memory_space<vmem>>, %arg3: memref<4x1xf32, #tpu.memory_space<vmem>>, %arg4: memref<4x1xf32, #tpu.memory_space<vmem>>, %arg5: memref<4x1xf32, #tpu.memory_space<vmem>>, %arg6: memref<2x4x384xf32, #tpu.memory_space<vmem>>, %arg7: memref<72x384xf32, #tpu.memory_space<vmem>>) attributes {dimension_semantics = [#tpu.dimension_semantics<arbitrary>], iteration_bounds = array<i64: 1>, scalar_prefetch = 0 : i64, scratch_operands = 1 : i64, tpu.core_type = #tpu.core_type<tc>, window_params = [{pipeline_mode = #tpu.pipeline_mode<synchronous>, transform_indices = @transform_0, window_bounds = array<i64: 2, 8, 512>}, {pipeline_mode = #tpu.pipeline_mode<synchronous>, transform_indices = @transform_1, window_bounds = array<i64: 4, 72>}, {pipeline_mode = #tpu.pipeline_mode<synchronous>, transform_indices = @transform_2, window_bounds = array<i64: 4, 1>}, {pipeline_mode = #tpu.pipeline_mode<synchronous>, transform_indices = @transform_3, window_bounds = array<i64: 4, 1>}, {pipeline_mode = #tpu.pipeline_mode<synchronous>, transform_indices = @transform_4, window_bounds = array<i64: 4, 1>}, {pipeline_mode = #tpu.pipeline_mode<synchronous>, transform_indices = @transform_5, window_bounds = array<i64: 2, 4, 384>}]} {
    %c0 = arith.constant 0 : index
    %c0_0 = arith.constant 0 : index
    %c0_1 = arith.constant 0 : index
    %0 = vector.load %arg1[%c0, %c0_0, %c0_1] : memref<2x8x512xbf16, #tpu.memory_space<vmem>>, vector<1x8x384xbf16>
    %1 = vector.shape_cast %0 : vector<1x8x384xbf16> to vector<8x384xbf16>
    %2 = arith.extf %1 : vector<8x384xbf16> to vector<8x384xf32>
    %c0_2 = arith.constant 0 : index
    %c0_3 = arith.constant 0 : index
    %3 = vector.load %arg7[%c0_2, %c0_3] : memref<72x384xf32, #tpu.memory_space<vmem>>, vector<8x384xf32>
    tpu.vector_store %arg7[%c0_2, %c0_3], %2 {strides = array<i32>} : memref<72x384xf32, #tpu.memory_space<vmem>>, vector<8x384xf32>,
    %c0_4 = arith.constant 0 : index
    %c0_5 = arith.constant 0 : index
    %c1 = arith.constant 1 : index
    %4 = vector.load %arg1[%c0_4, %c0_5, %c1] : memref<2x8x512xbf16, #tpu.memory_space<vmem>>, vector<1x8x384xbf16>
    %5 = vector.shape_cast %4 : vector<1x8x384xbf16> to vector<8x384xbf16>
    %6 = arith.extf %5 : vector<8x384xbf16> to vector<8x384xf32>
    %c8 = arith.constant 8 : index
    %c0_6 = arith.constant 0 : index
    %7 = vector.load %arg7[%c8, %c0_6] : memref<72x384xf32, #tpu.memory_space<vmem>>, vector<8x384xf32>
    tpu.vector_store %arg7[%c8, %c0_6], %6 {strides = array<i32>} : memref<72x384xf32, #tpu.memory_space<vmem>>, vector<8x384xf32>,
    %c0_7 = arith.constant 0 : index
    %c0_8 = arith.constant 0 : index
    %c2 = arith.constant 2 : index
    %8 = vector.load %arg1[%c0_7, %c0_8, %c2] : memref<2x8x512xbf16, #tpu.memory_space<vmem>>, vector<1x8x384xbf16>
    %9 = vector.shape_cast %8 : vector<1x8x384xbf16> to vector<8x384xbf16>
    %10 = arith.extf %9 : vector<8x384xbf16> to vector<8x384xf32>
    %c16 = arith.constant 16 : index
    %c0_9 = arith.constant 0 : index
    %11 = vector.load %arg7[%c16, %c0_9] : memref<72x384xf32, #tpu.memory_space<vmem>>, vector<8x384xf32>
    tpu.vector_store %arg7[%c16, %c0_9], %10 {strides = array<i32>} : memref<72x384xf32, #tpu.memory_space<vmem>>, vector<8x384xf32>,
    %c0_10 = arith.constant 0 : index
    %c0_11 = arith.constant 0 : index
    %c18 = arith.constant 18 : index
    %12 = vector.load %arg1[%c0_10, %c0_11, %c18] : memref<2x8x512xbf16, #tpu.memory_space<vmem>>, vector<1x8x384xbf16>
    %13 = vector.shape_cast %12 : vector<1x8x384xbf16> to vector<8x384xbf16>
    %14 = arith.extf %13 : vector<8x384xbf16> to vector<8x384xf32>
    %c24 = arith.constant 24 : index
    %c0_12 = arith.constant 0 : index
    %15 = vector.load %arg7[%c24, %c0_12] : memref<72x384xf32, #tpu.memory_space<vmem>>, vector<8x384xf32>
    tpu.vector_store %arg7[%c24, %c0_12], %14 {strides = array<i32>} : memref<72x384xf32, #tpu.memory_space<vmem>>, vector<8x384xf32>,
    %c0_13 = arith.constant 0 : index
    %c0_14 = arith.constant 0 : index
    %c19 = arith.constant 19 : index
    %16 = vector.load %arg1[%c0_13, %c0_14, %c19] : memref<2x8x512xbf16, #tpu.memory_space<vmem>>, vector<1x8x384xbf16>
    %17 = vector.shape_cast %16 : vector<1x8x384xbf16> to vector<8x384xbf16>
    %18 = arith.extf %17 : vector<8x384xbf16> to vector<8x384xf32>
    %c32 = arith.constant 32 : index
    %c0_15 = arith.constant 0 : index
    %19 = vector.load %arg7[%c32, %c0_15] : memref<72x384xf32, #tpu.memory_space<vmem>>, vector<8x384xf32>
    tpu.vector_store %arg7[%c32, %c0_15], %18 {strides = array<i32>} : memref<72x384xf32, #tpu.memory_space<vmem>>, vector<8x384xf32>,
    %c0_16 = arith.constant 0 : index
    %c0_17 = arith.constant 0 : index
    %c20 = arith.constant 20 : index
    %20 = vector.load %arg1[%c0_16, %c0_17, %c20] : memref<2x8x512xbf16, #tpu.memory_space<vmem>>, vector<1x8x384xbf16>
    %21 = vector.shape_cast %20 : vector<1x8x384xbf16> to vector<8x384xbf16>
    %22 = arith.extf %21 : vector<8x384xbf16> to vector<8x384xf32>
    %c40 = arith.constant 40 : index
    %c0_18 = arith.constant 0 : index
    %23 = vector.load %arg7[%c40, %c0_18] : memref<72x384xf32, #tpu.memory_space<vmem>>, vector<8x384xf32>
    tpu.vector_store %arg7[%c40, %c0_18], %22 {strides = array<i32>} : memref<72x384xf32, #tpu.memory_space<vmem>>, vector<8x384xf32>,
    %c0_19 = arith.constant 0 : index
    %c0_20 = arith.constant 0 : index
    %c36 = arith.constant 36 : index
    %24 = vector.load %arg1[%c0_19, %c0_20, %c36] : memref<2x8x512xbf16, #tpu.memory_space<vmem>>, vector<1x8x384xbf16>
    %25 = vector.shape_cast %24 : vector<1x8x384xbf16> to vector<8x384xbf16>
    %26 = arith.extf %25 : vector<8x384xbf16> to vector<8x384xf32>
    %c48 = arith.constant 48 : index
    %c0_21 = arith.constant 0 : index
    %27 = vector.load %arg7[%c48, %c0_21] : memref<72x384xf32, #tpu.memory_space<vmem>>, vector<8x384xf32>
    tpu.vector_store %arg7[%c48, %c0_21], %26 {strides = array<i32>} : memref<72x384xf32, #tpu.memory_space<vmem>>, vector<8x384xf32>,
    %c0_22 = arith.constant 0 : index
    %c0_23 = arith.constant 0 : index
    %c37 = arith.constant 37 : index
    %28 = vector.load %arg1[%c0_22, %c0_23, %c37] : memref<2x8x512xbf16, #tpu.memory_space<vmem>>, vector<1x8x384xbf16>
    %29 = vector.shape_cast %28 : vector<1x8x384xbf16> to vector<8x384xbf16>
    %30 = arith.extf %29 : vector<8x384xbf16> to vector<8x384xf32>
    %c56 = arith.constant 56 : index
    %c0_24 = arith.constant 0 : index
    %31 = vector.load %arg7[%c56, %c0_24] : memref<72x384xf32, #tpu.memory_space<vmem>>, vector<8x384xf32>
    tpu.vector_store %arg7[%c56, %c0_24], %30 {strides = array<i32>} : memref<72x384xf32, #tpu.memory_space<vmem>>, vector<8x384xf32>,
    %c0_25 = arith.constant 0 : index
    %c0_26 = arith.constant 0 : index
    %c38 = arith.constant 38 : index
    %32 = vector.load %arg1[%c0_25, %c0_26, %c38] : memref<2x8x512xbf16, #tpu.memory_space<vmem>>, vector<1x8x384xbf16>
    %33 = vector.shape_cast %32 : vector<1x8x384xbf16> to vector<8x384xbf16>
    %34 = arith.extf %33 : vector<8x384xbf16> to vector<8x384xf32>
    %c64 = arith.constant 64 : index
    %c0_27 = arith.constant 0 : index
    %35 = vector.load %arg7[%c64, %c0_27] : memref<72x384xf32, #tpu.memory_space<vmem>>, vector<8x384xf32>
    tpu.vector_store %arg7[%c64, %c0_27], %34 {strides = array<i32>} : memref<72x384xf32, #tpu.memory_space<vmem>>, vector<8x384xf32>,
    %c0_28 = arith.constant 0 : index
    %c0_29 = arith.constant 0 : index
    %36 = vector.load %arg2[%c0_28, %c0_29] : memref<4x72xbf16, #tpu.memory_space<vmem>>, vector<4x72xbf16>
    %c0_30 = arith.constant 0 : index
    %c0_31 = arith.constant 0 : index
    %37 = vector.load %arg7[%c0_30, %c0_31] : memref<72x384xf32, #tpu.memory_space<vmem>>, vector<72x384xf32>
    %38 = arith.truncf %37 : vector<72x384xf32> to vector<72x384xbf16>
    %cst = arith.constant dense<0.000000e+00> : vector<4x384xf32>
    %39 = tpu.matmul %36, %38, %cst {dimension_numbers = #tpu.dot_dimension_numbers<[1], [0], [0], [1], [0, 0, 1, 1], [], []>} : vector<4x72xbf16>, vector<72x384xbf16>, vector<4x384xf32> -> vector<4x384xf32>
    %c0_32 = arith.constant 0 : index
    %c0_33 = arith.constant 0 : index
    %40 = vector.load %arg3[%c0_32, %c0_33] : memref<4x1xf32, #tpu.memory_space<vmem>>, vector<4x1xf32>
    %41 = vector.broadcast %40 : vector<4x1xf32> to vector<4x384xf32>
    %42 = arith.addf %39, %41 : vector<4x384xf32>
    %c1_34 = arith.constant 1 : index
    %c0_35 = arith.constant 0 : index
    %c0_36 = arith.constant 0 : index
    %43 = vector.load %arg1[%c1_34, %c0_35, %c0_36] : memref<2x8x512xbf16, #tpu.memory_space<vmem>>, vector<1x8x384xbf16>
    %44 = vector.shape_cast %43 : vector<1x8x384xbf16> to vector<8x384xbf16>
    %45 = arith.extf %44 : vector<8x384xbf16> to vector<8x384xf32>
    %c0_37 = arith.constant 0 : index
    %c0_38 = arith.constant 0 : index
    %46 = vector.load %arg7[%c0_37, %c0_38] : memref<72x384xf32, #tpu.memory_space<vmem>>, vector<8x384xf32>
    tpu.vector_store %arg7[%c0_37, %c0_38], %45 {strides = array<i32>} : memref<72x384xf32, #tpu.memory_space<vmem>>, vector<8x384xf32>,
    %c1_39 = arith.constant 1 : index
    %c0_40 = arith.constant 0 : index
    %c1_41 = arith.constant 1 : index
    %47 = vector.load %arg1[%c1_39, %c0_40, %c1_41] : memref<2x8x512xbf16, #tpu.memory_space<vmem>>, vector<1x8x384xbf16>
    %48 = vector.shape_cast %47 : vector<1x8x384xbf16> to vector<8x384xbf16>
    %49 = arith.extf %48 : vector<8x384xbf16> to vector<8x384xf32>
    %c8_42 = arith.constant 8 : index
    %c0_43 = arith.constant 0 : index
    %50 = vector.load %arg7[%c8_42, %c0_43] : memref<72x384xf32, #tpu.memory_space<vmem>>, vector<8x384xf32>
    tpu.vector_store %arg7[%c8_42, %c0_43], %49 {strides = array<i32>} : memref<72x384xf32, #tpu.memory_space<vmem>>, vector<8x384xf32>,
    %c1_44 = arith.constant 1 : index
    %c0_45 = arith.constant 0 : index
    %c2_46 = arith.constant 2 : index
    %51 = vector.load %arg1[%c1_44, %c0_45, %c2_46] : memref<2x8x512xbf16, #tpu.memory_space<vmem>>, vector<1x8x384xbf16>
    %52 = vector.shape_cast %51 : vector<1x8x384xbf16> to vector<8x384xbf16>
    %53 = arith.extf %52 : vector<8x384xbf16> to vector<8x384xf32>
    %c16_47 = arith.constant 16 : index
    %c0_48 = arith.constant 0 : index
    %54 = vector.load %arg7[%c16_47, %c0_48] : memref<72x384xf32, #tpu.memory_space<vmem>>, vector<8x384xf32>
    tpu.vector_store %arg7[%c16_47, %c0_48], %53 {strides = array<i32>} : memref<72x384xf32, #tpu.memory_space<vmem>>, vector<8x384xf32>,
    %c1_49 = arith.constant 1 : index
    %c0_50 = arith.constant 0 : index
    %c18_51 = arith.constant 18 : index
    %55 = vector.load %arg1[%c1_49, %c0_50, %c18_51] : memref<2x8x512xbf16, #tpu.memory_space<vmem>>, vector<1x8x384xbf16>
    %56 = vector.shape_cast %55 : vector<1x8x384xbf16> to vector<8x384xbf16>
    %57 = arith.extf %56 : vector<8x384xbf16> to vector<8x384xf32>
    %c24_52 = arith.constant 24 : index
    %c0_53 = arith.constant 0 : index
    %58 = vector.load %arg7[%c24_52, %c0_53] : memref<72x384xf32, #tpu.memory_space<vmem>>, vector<8x384xf32>
    tpu.vector_store %arg7[%c24_52, %c0_53], %57 {strides = array<i32>} : memref<72x384xf32, #tpu.memory_space<vmem>>, vector<8x384xf32>,
    %c1_54 = arith.constant 1 : index
    %c0_55 = arith.constant 0 : index
    %c19_56 = arith.constant 19 : index
    %59 = vector.load %arg1[%c1_54, %c0_55, %c19_56] : memref<2x8x512xbf16, #tpu.memory_space<vmem>>, vector<1x8x384xbf16>
    %60 = vector.shape_cast %59 : vector<1x8x384xbf16> to vector<8x384xbf16>
    %61 = arith.extf %60 : vector<8x384xbf16> to vector<8x384xf32>
    %c32_57 = arith.constant 32 : index
    %c0_58 = arith.constant 0 : index
    %62 = vector.load %arg7[%c32_57, %c0_58] : memref<72x384xf32, #tpu.memory_space<vmem>>, vector<8x384xf32>
    tpu.vector_store %arg7[%c32_57, %c0_58], %61 {strides = array<i32>} : memref<72x384xf32, #tpu.memory_space<vmem>>, vector<8x384xf32>,
    %c1_59 = arith.constant 1 : index
    %c0_60 = arith.constant 0 : index
    %c20_61 = arith.constant 20 : index
    %63 = vector.load %arg1[%c1_59, %c0_60, %c20_61] : memref<2x8x512xbf16, #tpu.memory_space<vmem>>, vector<1x8x384xbf16>
    %64 = vector.shape_cast %63 : vector<1x8x384xbf16> to vector<8x384xbf16>
    %65 = arith.extf %64 : vector<8x384xbf16> to vector<8x384xf32>
    %c40_62 = arith.constant 40 : index
    %c0_63 = arith.constant 0 : index
    %66 = vector.load %arg7[%c40_62, %c0_63] : memref<72x384xf32, #tpu.memory_space<vmem>>, vector<8x384xf32>
    tpu.vector_store %arg7[%c40_62, %c0_63], %65 {strides = array<i32>} : memref<72x384xf32, #tpu.memory_space<vmem>>, vector<8x384xf32>,
    %c1_64 = arith.constant 1 : index
    %c0_65 = arith.constant 0 : index
    %c36_66 = arith.constant 36 : index
    %67 = vector.load %arg1[%c1_64, %c0_65, %c36_66] : memref<2x8x512xbf16, #tpu.memory_space<vmem>>, vector<1x8x384xbf16>
    %68 = vector.shape_cast %67 : vector<1x8x384xbf16> to vector<8x384xbf16>
    %69 = arith.extf %68 : vector<8x384xbf16> to vector<8x384xf32>
    %c48_67 = arith.constant 48 : index
    %c0_68 = arith.constant 0 : index
    %70 = vector.load %arg7[%c48_67, %c0_68] : memref<72x384xf32, #tpu.memory_space<vmem>>, vector<8x384xf32>
    tpu.vector_store %arg7[%c48_67, %c0_68], %69 {strides = array<i32>} : memref<72x384xf32, #tpu.memory_space<vmem>>, vector<8x384xf32>,
    %c1_69 = arith.constant 1 : index
    %c0_70 = arith.constant 0 : index
    %c37_71 = arith.constant 37 : index
    %71 = vector.load %arg1[%c1_69, %c0_70, %c37_71] : memref<2x8x512xbf16, #tpu.memory_space<vmem>>, vector<1x8x384xbf16>
    %72 = vector.shape_cast %71 : vector<1x8x384xbf16> to vector<8x384xbf16>
    %73 = arith.extf %72 : vector<8x384xbf16> to vector<8x384xf32>
    %c56_72 = arith.constant 56 : index
    %c0_73 = arith.constant 0 : index
    %74 = vector.load %arg7[%c56_72, %c0_73] : memref<72x384xf32, #tpu.memory_space<vmem>>, vector<8x384xf32>
    tpu.vector_store %arg7[%c56_72, %c0_73], %73 {strides = array<i32>} : memref<72x384xf32, #tpu.memory_space<vmem>>, vector<8x384xf32>,
    %c1_74 = arith.constant 1 : index
    %c0_75 = arith.constant 0 : index
    %c38_76 = arith.constant 38 : index
    %75 = vector.load %arg1[%c1_74, %c0_75, %c38_76] : memref<2x8x512xbf16, #tpu.memory_space<vmem>>, vector<1x8x384xbf16>
    %76 = vector.shape_cast %75 : vector<1x8x384xbf16> to vector<8x384xbf16>
    %77 = arith.extf %76 : vector<8x384xbf16> to vector<8x384xf32>
    %c64_77 = arith.constant 64 : index
    %c0_78 = arith.constant 0 : index
    %78 = vector.load %arg7[%c64_77, %c0_78] : memref<72x384xf32, #tpu.memory_space<vmem>>, vector<8x384xf32>
    tpu.vector_store %arg7[%c64_77, %c0_78], %77 {strides = array<i32>} : memref<72x384xf32, #tpu.memory_space<vmem>>, vector<8x384xf32>,
    %c0_79 = arith.constant 0 : index
    %c0_80 = arith.constant 0 : index
    %79 = vector.load %arg2[%c0_79, %c0_80] : memref<4x72xbf16, #tpu.memory_space<vmem>>, vector<4x72xbf16>
    %c0_81 = arith.constant 0 : index
    %c0_82 = arith.constant 0 : index
    %80 = vector.load %arg7[%c0_81, %c0_82] : memref<72x384xf32, #tpu.memory_space<vmem>>, vector<72x384xf32>
    %81 = arith.truncf %80 : vector<72x384xf32> to vector<72x384xbf16>
    %cst_83 = arith.constant dense<0.000000e+00> : vector<4x384xf32>
    %82 = tpu.matmul %79, %81, %cst_83 {dimension_numbers = #tpu.dot_dimension_numbers<[1], [0], [0], [1], [0, 0, 1, 1], [], []>} : vector<4x72xbf16>, vector<72x384xbf16>, vector<4x384xf32> -> vector<4x384xf32>
    %c0_84 = arith.constant 0 : index
    %c0_85 = arith.constant 0 : index
    %83 = vector.load %arg3[%c0_84, %c0_85] : memref<4x1xf32, #tpu.memory_space<vmem>>, vector<4x1xf32>
    %84 = vector.broadcast %83 : vector<4x1xf32> to vector<4x384xf32>
    %85 = arith.addf %82, %84 : vector<4x384xf32>
    %86 = tpu.iota {dimensions = array<i32: 1>} : vector<1x384xi32>
    %c18_i32 = arith.constant 18 : i32
    %c0_i32 = arith.constant 0 : i32
    %87 = arith.cmpi eq, %c18_i32, %c0_i32 : i32
    %c1_i32 = arith.constant 1 : i32
    %88 = arith.select %87, %c1_i32, %c18_i32 : i32
    %89 = vector.broadcast %88 : i32 to vector<1x384xi32>
    %90 = arith.remsi %86, %89 : vector<1x384xi32>
    %c0_i32_86 = arith.constant 0 : i32
    %91 = vector.broadcast %c0_i32_86 : i32 to vector<1x384xi32>
    %92 = arith.cmpi ne, %90, %91 : vector<1x384xi32>
    %c0_i32_87 = arith.constant 0 : i32
    %93 = vector.broadcast %c0_i32_87 : i32 to vector<1x384xi32>
    %94 = arith.cmpi slt, %90, %93 : vector<1x384xi32>
    %c0_i32_88 = arith.constant 0 : i32
    %95 = arith.cmpi slt, %88, %c0_i32_88 : i32
    %96 = vector.broadcast %95 : i1 to vector<1x384xi1>
    %97 = vector.broadcast %96 : vector<1x384xi1> to vector<1x384xi1>
    %98 = arith.xori %94, %97 : vector<1x384xi1>
    %99 = arith.andi %98, %92 : vector<1x384xi1>
    %100 = vector.broadcast %88 : i32 to vector<1x384xi32>
    %101 = arith.addi %90, %100 : vector<1x384xi32>
    %102 = arith.select %99, %101, %90 : vector<1x384xi1>, vector<1x384xi32>
    %c16_i32 = arith.constant 16 : i32
    %103 = vector.broadcast %c16_i32 : i32 to vector<1x384xi32>
    %104 = arith.cmpi slt, %102, %103 : vector<1x384xi32>
    %c288_i32 = arith.constant 288 : i32
    %105 = vector.broadcast %c288_i32 : i32 to vector<1x384xi32>
    %106 = arith.cmpi slt, %86, %105 : vector<1x384xi32>
    %107 = arith.andi %104, %106 : vector<1x384xi1>
    %108 = arith.extui %107 : vector<1x384xi1> to vector<1x384xi32>
    %109 = arith.sitofp %108 : vector<1x384xi32> to vector<1x384xf32>
    %110 = vector.broadcast %109 : vector<1x384xf32> to vector<4x384xf32>
    %111 = arith.mulf %42, %110 : vector<4x384xf32>
    %112 = vector.broadcast %109 : vector<1x384xf32> to vector<4x384xf32>
    %113 = arith.mulf %85, %112 : vector<4x384xf32>
    %114 = arith.addf %111, %113 : vector<4x384xf32>
    %cst_89 = arith.constant dense<0.000000e+00> : vector<4xf32>
    %115 = vector.multi_reduction <add>, %114, %cst_89 [1] : vector<4x384xf32> to vector<4xf32>
    %116 = vector.shape_cast %115 : vector<4xf32> to vector<4x1xf32>
    %cst_90 = arith.constant 0.001953125 : f32
    %117 = vector.broadcast %cst_90 : f32 to vector<4x1xf32>
    %118 = arith.mulf %116, %117 : vector<4x1xf32>
    %119 = vector.broadcast %118 : vector<4x1xf32> to vector<4x384xf32>
    %120 = arith.subf %42, %119 : vector<4x384xf32>
    %121 = vector.broadcast %109 : vector<1x384xf32> to vector<4x384xf32>
    %122 = arith.mulf %120, %121 : vector<4x384xf32>
    %123 = arith.mulf %122, %122 : vector<4x384xf32>
    %cst_91 = arith.constant dense<0.000000e+00> : vector<4xf32>
    %124 = vector.multi_reduction <add>, %123, %cst_91 [1] : vector<4x384xf32> to vector<4xf32>
    %125 = vector.shape_cast %124 : vector<4xf32> to vector<4x1xf32>
    %126 = vector.broadcast %118 : vector<4x1xf32> to vector<4x384xf32>
    %127 = arith.subf %85, %126 : vector<4x384xf32>
    %128 = vector.broadcast %109 : vector<1x384xf32> to vector<4x384xf32>
    %129 = arith.mulf %127, %128 : vector<4x384xf32>
    %130 = arith.mulf %129, %129 : vector<4x384xf32>
    %cst_92 = arith.constant dense<0.000000e+00> : vector<4xf32>
    %131 = vector.multi_reduction <add>, %130, %cst_92 [1] : vector<4x384xf32> to vector<4xf32>
    %132 = vector.shape_cast %131 : vector<4xf32> to vector<4x1xf32>
    %133 = arith.addf %125, %132 : vector<4x1xf32>
    %cst_93 = arith.constant 0.001953125 : f32
    %134 = vector.broadcast %cst_93 : f32 to vector<4x1xf32>
    %135 = arith.mulf %133, %134 : vector<4x1xf32>
    %cst_94 = arith.constant 9.99999974E-6 : f32
    %136 = vector.broadcast %cst_94 : f32 to vector<4x1xf32>
    %137 = arith.addf %135, %136 : vector<4x1xf32>
    %138 = math.rsqrt %137 : vector<4x1xf32>
    %c0_95 = arith.constant 0 : index
    %c0_96 = arith.constant 0 : index
    %139 = vector.load %arg4[%c0_95, %c0_96] : memref<4x1xf32, #tpu.memory_space<vmem>>, vector<4x1xf32>
    %140 = arith.mulf %139, %138 : vector<4x1xf32>
    %c0_97 = arith.constant 0 : index
    %c0_98 = arith.constant 0 : index
    %141 = vector.load %arg5[%c0_97, %c0_98] : memref<4x1xf32, #tpu.memory_space<vmem>>, vector<4x1xf32>
    %142 = arith.mulf %118, %140 : vector<4x1xf32>
    %143 = arith.subf %141, %142 : vector<4x1xf32>
    %144 = vector.broadcast %140 : vector<4x1xf32> to vector<4x384xf32>
    %145 = arith.mulf %42, %144 : vector<4x384xf32>
    %146 = vector.broadcast %143 : vector<4x1xf32> to vector<4x384xf32>
    %147 = arith.addf %145, %146 : vector<4x384xf32>
    %cst_99 = arith.constant 0.000000e+00 : f32
    %148 = vector.broadcast %cst_99 : f32 to vector<4x384xf32>
    %149 = arith.maximumf %147, %148 : vector<4x384xf32>
    %c0_100 = arith.constant 0 : index
    %c0_101 = arith.constant 0 : index
    %c0_102 = arith.constant 0 : index
    %150 = vector.load %arg6[%c0_100, %c0_101, %c0_102] : memref<2x4x384xf32, #tpu.memory_space<vmem>>, vector<1x4x384xf32>
    %151 = vector.shape_cast %150 : vector<1x4x384xf32> to vector<4x384xf32>
    %152 = vector.shape_cast %149 : vector<4x384xf32> to vector<1x4x384xf32>
    tpu.vector_store %arg6[%c0_100, %c0_101, %c0_102], %152 {strides = array<i32>} : memref<2x4x384xf32, #tpu.memory_space<vmem>>, vector<1x4x384xf32>,
    %153 = vector.broadcast %140 : vector<4x1xf32> to vector<4x384xf32>
    %154 = arith.mulf %85, %153 : vector<4x384xf32>
    %155 = vector.broadcast %143 : vector<4x1xf32> to vector<4x384xf32>
    %156 = arith.addf %154, %155 : vector<4x384xf32>
    %cst_103 = arith.constant 0.000000e+00 : f32
    %157 = vector.broadcast %cst_103 : f32 to vector<4x384xf32>
    %158 = arith.maximumf %156, %157 : vector<4x384xf32>
    %c1_104 = arith.constant 1 : index
    %c0_105 = arith.constant 0 : index
    %c0_106 = arith.constant 0 : index
    %159 = vector.load %arg6[%c1_104, %c0_105, %c0_106] : memref<2x4x384xf32, #tpu.memory_space<vmem>>, vector<1x4x384xf32>
    %160 = vector.shape_cast %159 : vector<1x4x384xf32> to vector<4x384xf32>
    %161 = vector.shape_cast %158 : vector<4x384xf32> to vector<1x4x384xf32>
    tpu.vector_store %arg6[%c1_104, %c0_105, %c0_106], %161 {strides = array<i32>} : memref<2x4x384xf32, #tpu.memory_space<vmem>>, vector<1x4x384xf32>,
    return
  }
  func.func @transform_0(%arg0: i32) -> (i32, i32, i32) {
    %c0_i32 = arith.constant 0 : i32
    %c0_i32_0 = arith.constant 0 : i32
    %c0_i32_1 = arith.constant 0 : i32
    %c0_i32_2 = arith.constant 0 : i32
    return %c0_i32, %c0_i32_0, %c0_i32_1 : i32, i32, i32
  }
  func.func @transform_1(%arg0: i32) -> (i32, i32) {
    %c0_i32 = arith.constant 0 : i32
    %c0_i32_0 = arith.constant 0 : i32
    %c0_i32_1 = arith.constant 0 : i32
    return %c0_i32, %c0_i32_0 : i32, i32
  }
  func.func @transform_2(%arg0: i32) -> (i32, i32) {
    %c0_i32 = arith.constant 0 : i32
    %c0_i32_0 = arith.constant 0 : i32
    %c0_i32_1 = arith.constant 0 : i32
    return %c0_i32, %c0_i32_0 : i32, i32
  }
  func.func @transform_3(%arg0: i32) -> (i32, i32) {
    %c0_i32 = arith.constant 0 : i32
    %c0_i32_0 = arith.constant 0 : i32
    %c0_i32_1 = arith.constant 0 : i32
    return %c0_i32, %c0_i32_0 : i32, i32
  }
  func.func @transform_4(%arg0: i32) -> (i32, i32) {
    %c0_i32 = arith.constant 0 : i32
    %c0_i32_0 = arith.constant 0 : i32
    %c0_i32_1 = arith.constant 0 : i32
    return %c0_i32, %c0_i32_0 : i32, i32
  }
  func.func @transform_5(%arg0: i32) -> (i32, i32, i32) {
    %c0_i32 = arith.constant 0 : i32
    %c0_i32_0 = arith.constant 0 : i32
    %c0_i32_1 = arith.constant 0 : i32
    %c0_i32_2 = arith.constant 0 : i32
    return %c0_i32, %c0_i32_0, %c0_i32_1 : i32, i32, i32
  }
}

</mosaic_0001>

<bundles_post_ra>
// kernel: decoder_conv_block.1
= control target key start
LH: loop header
LB: loop body
LE: loop exit
PB: predicated region body
PF: predicated region fallthrough
CT: control target
= control target key end

     0   :  { %v1169_v6 = vmov 0.0   ;;  %s1170_s22 = smov 90   ;;  %s1171_s23 = smov 92   ;;  %v1177_v17 = vmov 0   ;;  %vm1178_vm0 = vmmov 0   ;;  %vm243_vm1 = vcmask 736256   ;;  %s1441_s0 = inlined_call_operand.vmem [shape: bf16[2,8,512], index: 0, kind: input, shape index: {}]   ;;  %s1442_s2 = inlined_call_operand.vmem [shape: f32[4,1], index: 2, kind: input, shape index: {}]   ;;  %s1443_s1 = inlined_call_operand.vmem [shape: bf16[4,72], index: 1, kind: input, shape index: {}]   ;;  %s1444_s3 = inlined_call_operand.vmem [shape: f32[4,1], index: 3, kind: input, shape index: {}]   ;;  %s1445_s4 = inlined_call_operand.vmem [shape: f32[4,1], index: 4, kind: input, shape index: {}]   ;;  %s1446_s5 = inlined_call_operand.vmem [shape: f32[2,4,384], index: 5, kind: output, shape index: {}]  }
   0x1   :  { %v225_v0 = vld [vmem:[%s1441_s0] sm:$0xff]  ;;  %v170_v1 = vld [vmem:[%s1441_s0 + $0x8] sm:$0xff]  ;;  %975 = vmatprep.subr.bf16.mxu1 %v1169_v6  ;;  %s1172_s24 = smov 91   ;;  %s1173_s25 = smov 108   ;;  %v953_v11 = vld [vmem:[%s1441_s0 + $0x10] sm:$0xff]  ;;  %348 = vmatprep.mubr.bf16.mxu0 %v1177_v17  ;;  %vm187_vm2 = vcmask 752640  }
   0x2   :  { %v1216_v2 = vunpack.c.l.bf16 %v225_v0  ;;  %v1218_v3 = vunpack.c.h.bf16 %v225_v0  ;;  %v173_v4 = vunpack.c.l.bf16 %v170_v1  ;;  %v174_v5 = vunpack.c.h.bf16 %v170_v1  ;;  %s1174_s26 = smov 109   ;;  %s1175_s27 = smov 110   ;;  %v954_v12 = vld [vmem:[%s1441_s0 + $0x18] sm:$0xff]  ;;  %985 = vmatprep.mubr.msk.bf16.mxu1 %vm1178_vm0, %v1169_v6  ;;  %1165 = vset.pattern.permute.xlu1 %v1177_v17  ;;  %v296_v22 = vld [vmem:[%s1442_s2] sm:$0xf] }
   0x3   :  { %s1176_s28 = smov 126   ;;  %v1245_v13 = vunpack.c.l.bf16 %v953_v11  ;;  %v1247_v14 = vunpack.c.h.bf16 %v953_v11  ;;  %v599_v15 = vunpack.c.l.bf16 %v954_v12  ;;  %v600_v16 = vunpack.c.h.bf16 %v954_v12  ;;  %1166 = vset.pattern.permute.xlu0 %v1177_v17  ;;  %s1179_s8 = smov 127   ;;  %v665_v23 = vld [vmem:[%s1442_s2] sm:$0xf] }
   0x4   :  { %v1020_v7 = vpack.i.bf16 %v1218_v3, %v1216_v2  ;;  %v1030_v8 = vpack.i.bf16 %v173_v4, %v1218_v3  ;;  %v1025_v9 = vpack.i.bf16 %v174_v5, %v173_v4  ;;  %v1045_v10 = vpack.i.bf16 %v174_v5, %v1216_v2 }
   0x5   :  { %v1100_v18 = vpack.i.bf16 %v1247_v14, %v1245_v13  ;;  %v1105_v19 = vpack.i.bf16 %v600_v16, %v599_v15  ;;  %v1110_v20 = vpack.i.bf16 %v599_v15, %v1247_v14  ;;  %v1120_v21 = vpack.i.bf16 %v600_v16, %v1245_v13 }
   0x6   :  { %1021 = vrot.lane.b32.xlu0 %v1020_v7, %s1170_s22  ;;  %1031 = vrot.lane.b32.xlu1 %v1030_v8, %s1171_s23  ;;  %vm215_vm3 = vcmask 744448   ;;  %vm306_vm4 = vcmask 1043456   ;;  %vm131_vm5 = vcmask 891904   ;;  %vm159_vm6 = vcmask 883712  }
   0x7   :  { %vm75_vm7 = vcmask 1031168   ;;  %vm103_vm8 = vcmask 900096   ;;  %vm47_vm9 = vcmask 1039360   ;;  %vm302_vm10 = vcmask 588800  }
   0xa   :  { %1026 = vrot.lane.b32.xlu0 %v1025_v9, %s1170_s22  ;;  %1036 = vrot.lane.b32.xlu1 %v1030_v8, %s1172_s24 }
   0xe   :  { %1046 = vrot.lane.b32.xlu1 %v1045_v10, %s1172_s24  ;;  %1041 = vrot.lane.b32.xlu0 %v1045_v10, %s1171_s23 }
  0x12   :  { %1056 = vrot.lane.b32.xlu1 %v1030_v8, %s1173_s25  ;;  %1051 = vrot.lane.b32.xlu0 %v1030_v8, %s1174_s26 }
  0x16   :  { %1066 = vrot.lane.b32.xlu1 %v1045_v10, %s1173_s25  ;;  %1061 = vrot.lane.b32.xlu0 %v1045_v10, %s1174_s26 }
  0x1a   :  { %1076 = vrot.lane.b32.xlu1 %v1030_v8, %s1175_s27  ;;  %1071 = vrot.lane.b32.xlu0 %v1030_v8, %s1176_s28 }
  0x1e   :  { %1086 = vrot.lane.b32.xlu1 %v1045_v10, %s1175_s27  ;;  %1081 = vrot.lane.b32.xlu0 %v1045_v10, %s1176_s28 }
  0x22   :  { %1091 = vrot.lane.b32.xlu0 %v1030_v8, %s1179_s8  ;;  %1096 = vrot.lane.b32.xlu1 %v1045_v10, %s1179_s8 }
  0x26   :  { %1101 = vrot.lane.b32.xlu0 %v1100_v18, %s1170_s22  ;;  %1106 = vrot.lane.b32.xlu1 %v1105_v19, %s1170_s22 }
  0x2a   :  { %1111 = vrot.lane.b32.xlu0 %v1110_v20, %s1171_s23  ;;  %1116 = vrot.lane.b32.xlu1 %v1110_v20, %s1172_s24 }
  0x2e   :  { %1121 = vrot.lane.b32.xlu0 %v1120_v21, %s1171_s23  ;;  %1126 = vrot.lane.b32.xlu1 %v1120_v21, %s1172_s24 }
  0x32   :  { %1131 = vrot.lane.b32.xlu0 %v1110_v20, %s1174_s26  ;;  %1136 = vrot.lane.b32.xlu1 %v1110_v20, %s1173_s25 }
  0x36   :  { %1141 = vrot.lane.b32.xlu0 %v1120_v21, %s1174_s26  ;;  %1146 = vrot.lane.b32.xlu1 %v1120_v21, %s1173_s25 }
  0x3a   :  { %1151 = vrot.lane.b32.xlu0 %v1110_v20, %s1176_s28  ;;  %1156 = vrot.lane.b32.xlu1 %v1110_v20, %s1175_s27 }
  0x3e   :  { %443 = vrot.lane.b32.xlu0 %v1245_v13, %s1176_s28  ;;  %470 = vrot.lane.b32.xlu1 %v1245_v13, %s1175_s27 }
  0x42   :  { %1161 = vrot.lane.b32.xlu0 %v1110_v20, %s1179_s8  ;;  %416 = vrot.lane.b32.xlu1 %v1245_v13, %s1179_s8 }
  0x46   :  { %449 = vrot.lane.b32.xlu0 %v600_v16, %s1176_s28  ;;  %476 = vrot.lane.b32.xlu1 %v600_v16, %s1175_s27 }
  0x4a   :  { %422 = vrot.lane.b32.xlu0 %v600_v16, %s1179_s8  ;;  %299 = vperm.xlu1 %1165, %v296_v22  }
  0x4e   :  { %668 = vperm.xlu0 %1166, %v665_v23  }
  0x78   :  { %v1022_v24 = vpop.permute.xlu0 %1021  ;;  %v1032_v25 = vpop.permute.xlu1 %1031 }
  0x79   :  { %v1024_v26 = vunpack.i.h.bf16 %v1022_v24  ;;  %v1023_v27 = vunpack.i.l.bf16 %v1022_v24  ;;  %v1034_v29 = vunpack.i.h.bf16 %v1032_v25  ;;  %v1033_v30 = vunpack.i.l.bf16 %v1032_v25 }
  0x7b   :  { %v244_v28 = vsel %vm243_vm1, %v1023_v27, %v1024_v26  ;;  %v189_v45 = vsel %vm187_vm2, %v1033_v30, %v1034_v29 }
  0x7c   :  { %v1027_v31 = vpop.permute.xlu0 %1026  ;;  %v1037_v32 = vpop.permute.xlu1 %1036  ;;  %v293_v37 = vpack.c.bf16 %v244_v28, %v244_v28 }
  0x7d   :  { %v1029_v33 = vunpack.i.h.bf16 %v1027_v31  ;;  %v1028_v34 = vunpack.i.l.bf16 %v1027_v31  ;;  %v1039_v35 = vunpack.i.h.bf16 %v1037_v32  ;;  %v1038_v36 = vunpack.i.l.bf16 %v1037_v32 }
  0x7e   :  { %v308_v50 = vsel %vm306_vm4, %v293_v37, 0  ;;  %v22_v37 = vld [vmem:[%s1441_s0 + $0x8] sm:$0xf] }
  0x7f   :  { %v245_v38 = vsel %vm243_vm1, %v1024_v26, %v1028_v34  ;;  %v246_v39 = vsel %vm243_vm1, %v1028_v34, %v1029_v33  ;;  %v217_v40 = vsel %vm215_vm3, %v1038_v36, %v1039_v35 }
  0x80   :  { %v1047_v41 = vpop.permute.xlu1 %1046  ;;  %v1042_v42 = vpop.permute.xlu0 %1041  ;;  %v294_v43 = vpack.c.bf16 %v245_v38, %v245_v38  ;;  %v295_v44 = vpack.c.bf16 %v246_v39, %v246_v39  ;;  %v291_v52 = vpack.c.bf16 %v217_v40, %v189_v45 }
  0x81   :  { %v1049_v46 = vunpack.i.h.bf16 %v1047_v41  ;;  %v1048_v47 = vunpack.i.l.bf16 %v1047_v41  ;;  %v1044_v48 = vunpack.i.h.bf16 %v1042_v42  ;;  %v1043_v49 = vunpack.i.l.bf16 %v1042_v42 }
  0x82   :  { %934 = vmatprep.subr.msk.bf16.mxu0 %vm306_vm4, %v294_v43  ;;  %v314_v51 = vsel %vm306_vm4, %v295_v44, 0 }
  0x83   :  { %323 = vmatpush1.bf16.msra.mxu0 %v308_v50  ;;  %976 = vmatpush3.bf16.msra.mxu1 %v314_v51  ;;  %v188_v53 = vsel %vm187_vm2, %v1043_v49, %v1033_v30  ;;  %v216_v54 = vsel %vm215_vm3, %v1048_v47, %v1038_v36  ;;  %v190_v55 = vsel %vm187_vm2, %v1034_v29, %v1044_v48 }
  0x84   :  { %324 = vmatprep.subr.bf16.mxu0 %v291_v52  ;;  %v1057_v56 = vpop.permute.xlu1 %1056  ;;  %v1052_v57 = vpop.permute.xlu0 %1051  ;;  %977 = vmatprep.subr.bf16.mxu1 %v1169_v6  ;;  %v290_v58 = vpack.c.bf16 %v216_v54, %v188_v53  ;;  %v218_v59 = vsel %vm215_vm3, %v1039_v35, %v1049_v46  ;;  %v25_v46 = vunpack.c.l.bf16 %v22_v37 }
  0x85   :  { %v1059_v60 = vunpack.i.h.bf16 %v1057_v56  ;;  %v1058_v61 = vunpack.i.l.bf16 %v1057_v56  ;;  %v1054_v62 = vunpack.i.h.bf16 %v1052_v57  ;;  %v1053_v63 = vunpack.i.l.bf16 %v1052_v57 }
  0x86   :  { %v292_v0 = vpack.c.bf16 %v218_v59, %v190_v55 }
  0x87   :  { %325 = vmatpush1.bf16.msra.mxu0 %v290_v58  ;;  %v133_v1 = vsel %vm131_vm5, %v1053_v63, %v1054_v62  ;;  %v161_v4 = vsel %vm159_vm6, %v1058_v61, %v1059_v60 }
  0x88   :  { %978 = vmatpush3.bf16.msra.mxu1 %v292_v0  ;;  %v1067_v5 = vpop.permute.xlu1 %1066  ;;  %v1062_v7 = vpop.permute.xlu0 %1061  ;;  %v288_v8 = vpack.c.bf16 %v161_v4, %v133_v1 }
  0x89   :  { %v1069_v9 = vunpack.i.h.bf16 %v1067_v5  ;;  %v1068_v10 = vunpack.i.l.bf16 %v1067_v5  ;;  %v1064_v11 = vunpack.i.h.bf16 %v1062_v7  ;;  %v1063_v12 = vunpack.i.l.bf16 %v1062_v7  ;;  %979 = vmatprep.subr.bf16.mxu1 %v1169_v6 }
  0x8a   :  { %326 = vmatprep.subr.bf16.mxu0 %v288_v8 }
  0x8b   :  { %v132_v15 = vsel %vm131_vm5, %v1063_v12, %v1053_v63  ;;  %v160_v16 = vsel %vm159_vm6, %v1068_v10, %v1058_v61  ;;  %v134_v18 = vsel %vm131_vm5, %v1054_v62, %v1064_v11  ;;  %v162_v19 = vsel %vm159_vm6, %v1059_v60, %v1069_v9  ;;  %v253_v63 = vld [vmem:[%s1443_s1] sm:$0x3] }
  0x8c   :  { %v1077_v20 = vpop.permute.xlu1 %1076  ;;  %v1072_v21 = vpop.permute.xlu0 %1071  ;;  %v287_v22 = vpack.c.bf16 %v160_v16, %v132_v15  ;;  %v289_v23 = vpack.c.bf16 %v162_v19, %v134_v18 }
  0x8d   :  { %v1079_v24 = vunpack.i.h.bf16 %v1077_v20  ;;  %v1078_v25 = vunpack.i.l.bf16 %v1077_v20  ;;  %v1074_v26 = vunpack.i.h.bf16 %v1072_v21  ;;  %v1073_v27 = vunpack.i.l.bf16 %v1072_v21 }
  0x8e   :  { %327 = vmatpush1.bf16.msra.mxu0 %v287_v22  ;;  %980 = vmatpush3.bf16.msra.mxu1 %v289_v23 }
  0x8f   :  { %v77_v28 = vsel %vm75_vm7, %v1073_v27, %v1074_v26  ;;  %v105_v29 = vsel %vm103_vm8, %v1078_v25, %v1079_v24  ;;  %981 = vmatprep.subr.bf16.mxu1 %v1169_v6 }
  0x90   :  { %v1087_v30 = vpop.permute.xlu1 %1086  ;;  %v1082_v31 = vpop.permute.xlu0 %1081  ;;  %v285_v32 = vpack.c.bf16 %v105_v29, %v77_v28 }
  0x91   :  { %v1089_v33 = vunpack.i.h.bf16 %v1087_v30  ;;  %v1088_v34 = vunpack.i.l.bf16 %v1087_v30  ;;  %v1084_v35 = vunpack.i.h.bf16 %v1082_v31  ;;  %v1083_v36 = vunpack.i.l.bf16 %v1082_v31 }
  0x92   :  { %328 = vmatprep.subr.bf16.mxu0 %v285_v32 }
  0x93   :  { %v76_v38 = vsel %vm75_vm7, %v1083_v36, %v1073_v27  ;;  %v104_v39 = vsel %vm103_vm8, %v1088_v34, %v1078_v25  ;;  %v78_v40 = vsel %vm75_vm7, %v1074_v26, %v1084_v35  ;;  %v106_v41 = vsel %vm103_vm8, %v1079_v24, %v1089_v33 }
  0x94   :  { %v1092_v42 = vpop.permute.xlu0 %1091  ;;  %v1097_v43 = vpop.permute.xlu1 %1096  ;;  %v284_v44 = vpack.c.bf16 %v104_v39, %v76_v38  ;;  %v286_v45 = vpack.c.bf16 %v106_v41, %v78_v40 }
  0x95   :  { %v1094_v47 = vunpack.i.h.bf16 %v1092_v42  ;;  %v1093_v48 = vunpack.i.l.bf16 %v1092_v42  ;;  %v1099_v49 = vunpack.i.h.bf16 %v1097_v43  ;;  %v1098_v50 = vunpack.i.l.bf16 %v1097_v43 }
  0x96   :  { %329 = vmatpush1.bf16.msra.mxu0 %v284_v44  ;;  %982 = vmatpush3.bf16.msra.mxu1 %v286_v45 }
  0x97   :  { %983 = vmatprep.subr.bf16.mxu1 %v1169_v6  ;;  %v49_v51 = vsel %vm47_vm9, %v1093_v48, %v1094_v47  ;;  %v50_v52 = vsel %vm47_vm9, %v1094_v47, %v1099_v49  ;;  %v48_v53 = vsel %vm47_vm9, %v1098_v50, %v1093_v48 }
  0x98   :  { %v1102_v54 = vpop.permute.xlu0 %1101  ;;  %v1107_v55 = vpop.permute.xlu1 %1106  ;;  %v282_v56 = vpack.c.bf16 %v49_v51, %v1218_v3  ;;  %v283_v57 = vpack.c.bf16 %v50_v52, %v25_v46  ;;  %v281_v58 = vpack.c.bf16 %v48_v53, %v1216_v2 }
  0x99   :  { %v1104_v59 = vunpack.i.h.bf16 %v1102_v54  ;;  %v1103_v60 = vunpack.i.l.bf16 %v1102_v54  ;;  %v1109_v61 = vunpack.i.h.bf16 %v1107_v55  ;;  %v1108_v62 = vunpack.i.l.bf16 %v1107_v55 }
  0x9a   :  { %330 = vmatprep.subr.bf16.mxu0 %v282_v56  ;;  %984 = vmatpush3.bf16.msra.mxu1 %v283_v57 }
  0x9b   :  { %v614_v0 = vsel %vm243_vm1, %v1104_v59, %v1108_v62  ;;  %331 = vmatpush1.bf16.msra.mxu0 %v281_v58  ;;  %989 = vmatprep.subr.bf16.mxu1 %v1169_v6  ;;  %v613_v3 = vsel %vm243_vm1, %v1103_v60, %v1104_v59  ;;  %v615_v2 = vsel %vm243_vm1, %v1108_v62, %v1109_v61 }
  0x9c   :  { %v663_v1 = vpack.c.bf16 %v614_v0, %v614_v0  ;;  %v1112_v4 = vpop.permute.xlu0 %1111  ;;  %v1117_v5 = vpop.permute.xlu1 %1116  ;;  %v662_v7 = vpack.c.bf16 %v613_v3, %v613_v3  ;;  %v664_v8 = vpack.c.bf16 %v615_v2, %v615_v2 }
  0x9d   :  { %v1114_v9 = vunpack.i.h.bf16 %v1112_v4  ;;  %v1113_v10 = vunpack.i.l.bf16 %v1112_v4  ;;  %v1119_v11 = vunpack.i.h.bf16 %v1117_v5  ;;  %v1118_v12 = vunpack.i.l.bf16 %v1117_v5  ;;  %986 = vmatmul.mubr.msk.bf16.vlgmr.msra.gmra.mxu1 %vm302_vm10, %v253_v63 }
  0x9e   :  { %955 = vmatprep.subr.msk.bf16.mxu0 %vm306_vm4, %v663_v1  ;;  %935 = vmatmul.mubr.msk.bf16.vlgmr.msra.gmra.mxu0 %vm302_vm10, %v253_v63  ;;  %v675_v15 = vsel %vm306_vm4, %v662_v7, 0  ;;  %v681_v16 = vsel %vm306_vm4, %v664_v8, 0 }
  0x9f   :  { %690 = vmatpush1.bf16.msra.mxu0 %v675_v15  ;;  %990 = vmatpush3.bf16.msra.mxu1 %v681_v16  ;;  %v560_v18 = vsel %vm187_vm2, %v1113_v10, %v1114_v9  ;;  %v587_v19 = vsel %vm215_vm3, %v1118_v12, %v1119_v11 }
  0xa0   :  { %v1122_v20 = vpop.permute.xlu0 %1121  ;;  %v1127_v21 = vpop.permute.xlu1 %1126  ;;  %v660_v22 = vpack.c.bf16 %v587_v19, %v560_v18  ;;  %991 = vmatprep.subr.bf16.mxu1 %v1169_v6  ;;  %715 = vmatprep.mubr.bf16.mxu0 %v1177_v17 }
  0xa1   :  { %v1124_v23 = vunpack.i.h.bf16 %v1122_v20  ;;  %v1123_v24 = vunpack.i.l.bf16 %v1122_v20  ;;  %v1129_v25 = vunpack.i.h.bf16 %v1127_v21  ;;  %v1128_v26 = vunpack.i.l.bf16 %v1127_v21  ;;  %999 = vmatprep.mubr.msk.bf16.mxu1 %vm1178_vm0, %v1169_v6 }
  0xa2   :  { %691 = vmatprep.subr.bf16.mxu0 %v660_v22  ;;  %v622_v22 = vld [vmem:[%s1443_s1] sm:$0x3] }
  0xa3   :  { %v559_v27 = vsel %vm187_vm2, %v1123_v24, %v1113_v10  ;;  %v561_v28 = vsel %vm187_vm2, %v1114_v9, %v1124_v23  ;;  %v586_v29 = vsel %vm215_vm3, %v1128_v26, %v1118_v12  ;;  %v588_v30 = vsel %vm215_vm3, %v1119_v11, %v1129_v25  ;;  %v938_v10 = vld [vmem:[%s1441_s0 + $0x18] sm:$0xf] }
  0xa4   :  { %v659_v31 = vpack.c.bf16 %v586_v29, %v559_v27  ;;  %v661_v32 = vpack.c.bf16 %v588_v30, %v561_v28  ;;  %v1132_v33 = vpop.permute.xlu0 %1131  ;;  %v1137_v17 = vpop.permute.xlu1 %1136  ;;  %v402_v21 = vunpack.c.l.bf16 %v938_v10 }
  0xa5   :  { %v1134_v34 = vunpack.i.h.bf16 %v1132_v33  ;;  %v1133_v35 = vunpack.i.l.bf16 %v1132_v33  ;;  %v1139_v36 = vunpack.i.h.bf16 %v1137_v17  ;;  %v1138_v37 = vunpack.i.l.bf16 %v1137_v17 }
  0xa6   :  { %692 = vmatpush1.bf16.msra.mxu0 %v659_v31  ;;  %992 = vmatpush3.bf16.msra.mxu1 %v661_v32 }
  0xa7   :  { %v506_v38 = vsel %vm131_vm5, %v1133_v35, %v1134_v34  ;;  %v533_v39 = vsel %vm159_vm6, %v1138_v37, %v1139_v36  ;;  %993 = vmatprep.subr.bf16.mxu1 %v1169_v6 }
  0xa8   :  { %v1142_v40 = vpop.permute.xlu0 %1141  ;;  %v1147_v41 = vpop.permute.xlu1 %1146  ;;  %v657_v42 = vpack.c.bf16 %v533_v39, %v506_v38 }
  0xa9   :  { %v1144_v43 = vunpack.i.h.bf16 %v1142_v40  ;;  %v1143_v44 = vunpack.i.l.bf16 %v1142_v40  ;;  %v1149_v45 = vunpack.i.h.bf16 %v1147_v41  ;;  %v1148_v46 = vunpack.i.l.bf16 %v1147_v41 }
  0xaa   :  { %693 = vmatprep.subr.bf16.mxu0 %v657_v42 }
  0xab   :  { %v505_v47 = vsel %vm131_vm5, %v1143_v44, %v1133_v35  ;;  %v507_v48 = vsel %vm131_vm5, %v1134_v34, %v1144_v43  ;;  %v532_v49 = vsel %vm159_vm6, %v1148_v46, %v1138_v37  ;;  %v534_v50 = vsel %vm159_vm6, %v1139_v36, %v1149_v45 }
  0xac   :  { %v656_v51 = vpack.c.bf16 %v532_v49, %v505_v47  ;;  %v658_v52 = vpack.c.bf16 %v534_v50, %v507_v48  ;;  %v1152_v53 = vpop.permute.xlu0 %1151  ;;  %v1157_v54 = vpop.permute.xlu1 %1156 }
  0xad   :  { %v1154_v55 = vunpack.i.h.bf16 %v1152_v53  ;;  %v1153_v56 = vunpack.i.l.bf16 %v1152_v53  ;;  %v1159_v57 = vunpack.i.h.bf16 %v1157_v54  ;;  %v1158_v58 = vunpack.i.l.bf16 %v1157_v54 }
  0xae   :  { %694 = vmatpush1.bf16.msra.mxu0 %v656_v51  ;;  %994 = vmatpush3.bf16.msra.mxu1 %v658_v52 }
  0xaf   :  { %v452_v59 = vsel %vm75_vm7, %v1153_v56, %v1154_v55  ;;  %v479_v60 = vsel %vm103_vm8, %v1158_v58, %v1159_v57  ;;  %995 = vmatprep.subr.bf16.mxu1 %v1169_v6 }
  0xb0   :  { %v444_v61 = vpop.permute.xlu0 %443  ;;  %v471_v62 = vpop.permute.xlu1 %470  ;;  %v654_v63 = vpack.c.bf16 %v479_v60, %v452_v59 }
  0xb1   :  { %v451_v0 = vsel %vm75_vm7, %v444_v61, %v1153_v56  ;;  %v478_v3 = vsel %vm103_vm8, %v471_v62, %v1158_v58 }
  0xb2   :  { %v653_v2 = vpack.c.bf16 %v478_v3, %v451_v0  ;;  %695 = vmatprep.subr.bf16.mxu0 %v654_v63 }
  0xb4   :  { %v1162_v1 = vpop.permute.xlu0 %1161  ;;  %v417_v4 = vpop.permute.xlu1 %416  ;;  %696 = vmatpush1.bf16.msra.mxu0 %v653_v2 }
  0xb5   :  { %v1164_v5 = vunpack.i.h.bf16 %v1162_v1  ;;  %v1163_v7 = vunpack.i.l.bf16 %v1162_v1 }
  0xb7   :  { %v424_v8 = vsel %vm47_vm9, %v417_v4, %v1163_v7  ;;  %v425_v9 = vsel %vm47_vm9, %v1163_v7, %v1164_v5 }
  0xb8   :  { %v650_v11 = vpack.c.bf16 %v424_v8, %v1245_v13  ;;  %v450_v12 = vpop.permute.xlu0 %449  ;;  %v477_v15 = vpop.permute.xlu1 %476  ;;  %v651_v16 = vpack.c.bf16 %v425_v9, %v1247_v14  ;;  %v764_v14 = vlaneseq }
  0xb9   :  { %v453_v18 = vsel %vm75_vm7, %v1154_v55, %v450_v12  ;;  %v480_v19 = vsel %vm103_vm8, %v1159_v57, %v477_v15 }
  0xba   :  { %v655_v20 = vpack.c.bf16 %v480_v19, %v453_v18  ;;  %697 = vmatprep.subr.bf16.mxu0 %v651_v16  ;;  %v765_v25 = vand.u32 127, %v764_v14 }
  0xbb   :  { %698 = vmatpush1.bf16.msra.mxu0 %v650_v11 }
  0xbc   :  { %v423_v23 = vpop.permute.xlu0 %422  ;;  %996 = vmatpush3.bf16.msra.mxu1 %v655_v20  ;;  %v766_v26 = vadd.s32 128, %v765_v25  ;;  %v767_v27 = vadd.s32 256, %v765_v25  ;;  %v1369_v30 = vmul.u32.u64.low 3817748708, %v765_v25  ;;  %v1370_v31 = vmul.u32.u64.high 3817748708, %v765_v25, %v1369_v30 }
  0xbd   :  { %v426_v13 = vsel %vm47_vm9, %v1164_v5, %v423_v23  ;;  %997 = vmatprep.subr.bf16.mxu1 %v1169_v6 }
  0xbe   :  { %v652_v24 = vpack.c.bf16 %v426_v13, %v402_v21  ;;  %956 = vmatmul.mubr.msk.bf16.vlgmr.msra.gmra.mxu0 %vm302_vm10, %v622_v22  ;;  %v1372_v32 = vmul.u32.u64.low 3817748708, %v766_v26  ;;  %v1373_v33 = vmul.u32.u64.high 3817748708, %v766_v26, %v1372_v32  ;;  %v774_v41 = vshrl.u32 %v1370_v31, 4 }
  0xbf   :  { %v1375_v35 = vmul.u32.u64.low 3817748708, %v767_v27  ;;  %v1376_v36 = vmul.u32.u64.high 3817748708, %v767_v27, %v1375_v35  ;;  %vm821_vm8 = vcmp.lt.s32.totalorder %v767_v27, 288 }
  0xc0   :  { %998 = vmatpush3.bf16.msra.mxu1 %v652_v24  ;;  %v785_v42 = vshrl.u32 %v1373_v33, 4  ;;  %v775_v44 = vmul.u32 18, %v774_v41 }
  0xc1   :  { %v796_v43 = vshrl.u32 %v1376_v36, 4 }
  0xc2   :  { %v786_v45 = vmul.u32 18, %v785_v42  ;;  %v776_v47 = vsub.s32 %v765_v25, %v775_v44 }
  0xc3   :  { %1000 = vmatmul.mubr.msk.bf16.vlgmr.msra.gmra.mxu1 %vm302_vm10, %v622_v22  ;;  %v797_v46 = vmul.u32 18, %v796_v43 }
  0xc4   :  { %v787_v48 = vsub.s32 %v766_v26, %v786_v45  ;;  %vm801_vm11 = vcmp.ne.s32.totalorder %v776_v47, 0  ;;  %vm804_vm12 = vcmp.lt.s32.totalorder %v776_v47, 0  ;;  %v810_v50 = vadd.s32 18, %v776_v47 }
  0xc5   :  { %v798_v49 = vsub.s32 %v767_v27, %v797_v46  ;;  %vm807_vm1 = vmand %vm804_vm12, %vm801_vm11  ;;  %v300_v55 = vpop.permute.xlu1 %299 }
  0xc6   :  { %vm802_vm13 = vcmp.ne.s32.totalorder %v787_v48, 0  ;;  %vm805_vm14 = vcmp.lt.s32.totalorder %v787_v48, 0  ;;  %v811_v51 = vadd.s32 18, %v787_v48  ;;  %v813_v53 = vsel %vm807_vm1, %v810_v50, %v776_v47 }
  0xc7   :  { %vm803_vm15 = vcmp.ne.s32.totalorder %v798_v49, 0  ;;  %vm806_vm0 = vcmp.lt.s32.totalorder %v798_v49, 0  ;;  %vm808_vm2 = vmand %vm805_vm14, %vm802_vm13  ;;  %v812_v52 = vadd.s32 18, %v798_v49  ;;  %vm816_vm5 = vcmp.lt.s32.totalorder %v813_v53, 16 }
  0xc8   :  { %vm809_vm3 = vmand %vm806_vm0, %vm803_vm15  ;;  %v814_v54 = vsel %vm808_vm2, %v811_v51, %v787_v48  ;;  %v958_v59 = vsel %vm816_vm5, 1.0, %v1169_v6 }
  0xc9   :  { %v815_v56 = vsel %vm809_vm3, %v812_v52, %v798_v49  ;;  %v669_v57 = vpop.permute.xlu0 %668  ;;  %vm817_vm6 = vcmp.lt.s32.totalorder %v814_v54, 16 }
  0xca   :  { %vm818_vm7 = vcmp.lt.s32.totalorder %v815_v56, 16  ;;  %v959_v63 = vsel %vm817_vm6, 1.0, %v1169_v6 }
  0xcb   :  { %vm824_vm9 = vmand %vm818_vm7, %vm821_vm8 }
  0xcc   :  { %v960_v10 = vsel %vm824_vm9, 1.0, %v1169_v6 }
 0x15d   :  { %v391_v28 = vpop.f32.mrf.mxu1 }
 0x15e   :  { %v350_v29 = vpop.f32.mrf.mxu0  ;;  %v1393_v4 = vadd.f32 %v391_v28, %v300_v55 }
 0x15f   :  { %v987_v17 = vpop.f32.mrf.mxu1  ;;  %v1381_v58 = vadd.f32 %v350_v29, %v300_v55 }
 0x160   :  { %v352_v34 = vpop.f32.mrf.mxu0  ;;  %v833_v20 = vmul.f32 %v960_v10, %v1393_v4 }
 0x161   :  { %v394_v37 = vpop.f32.mrf.mxu1  ;;  %v1384_v61 = vadd.f32 %v352_v34, %v300_v55  ;;  %v831_v3 = vmul.f32 %v958_v59, %v1381_v58 }
 0x162   :  { %v354_v38 = vpop.f32.mrf.mxu0 }
 0x163   :  { %v988_v39 = vpop.f32.mrf.mxu1  ;;  %v832_v7 = vmul.f32 %v959_v63, %v1384_v61 }
 0x164   :  { %v355_v40 = vpop.f32.mrf.mxu0 }
 0x17e   :  { %v717_v60 = vpop.f32.mrf.mxu0 }
 0x17f   :  { %v1386_v62 = vadd.f32 %v717_v60, %v669_v57 }
 0x180   :  { %v719_v0 = vpop.f32.mrf.mxu0 }
 0x181   :  { %v834_v2 = vmul.f32 %v958_v59, %v1386_v62  ;;  %v1391_v1 = vadd.f32 %v719_v0, %v669_v57 }
 0x182   :  { %v721_v5 = vpop.f32.mrf.mxu0 }
 0x183   :  { %v835_v8 = vmul.f32 %v959_v63, %v1391_v1  ;;  %v758_v9 = vpop.f32.mrf.mxu1  ;;  %v837_v11 = vadd.f32 %v834_v2, %v831_v3  ;;  %v886_v2 = vld [vmem:[%s1445_s4] sm:$0xf] }
 0x184   :  { %v1398_v12 = vadd.f32 %v758_v9, %v669_v57  ;;  %v722_v15 = vpop.f32.mrf.mxu0 }
 0x185   :  { %v1001_v16 = vpop.f32.mrf.mxu1  ;;  %v838_v18 = vadd.f32 %v835_v8, %v832_v7  ;;  %v840_v22 = vsel %vm306_vm4, %v837_v11, 0.0 }
 0x186   :  { %v836_v19 = vmul.f32 %v960_v10, %v1398_v12 }
 0x187   :  { %v761_v21 = vpop.f32.mrf.mxu1  ;;  %v841_v23 = vsel %vm306_vm4, %v838_v18, 0.0 }
 0x188   :  { %v839_v13 = vadd.f32 %v836_v19, %v833_v20  ;;  %v842_v24 = vadd.f32 %v841_v23, %v840_v22 }
 0x189   :  { %v1002_v14 = vpop.f32.mrf.mxu1 }
 0x18a   :  { %v843_v6 = vsel %vm306_vm4, %v839_v13, 0.0 }
 0x18b   :  { %v844_v25 = vadd.f32 %v843_v6, %v842_v24 }
 0x18d   :  { %845 = vadd.xlane.f32.xlu1 %v844_v25 }
 0x216   :  { %v846_v26 = vpop.xlane.xlu1 %845 }
 0x217   :  { %v847_v27 = vmul.f32 0.001953125, %v846_v26 }
 0x219   :  { %v864_v28 = vsub.f32 %v1386_v62, %v847_v27  ;;  %v865_v29 = vsub.f32 %v1391_v1, %v847_v27  ;;  %v866_v30 = vsub.f32 %v1398_v12, %v847_v27  ;;  %v848_v31 = vsub.f32 %v1381_v58, %v847_v27 }
 0x21a   :  { %v849_v32 = vsub.f32 %v1384_v61, %v847_v27  ;;  %v850_v33 = vsub.f32 %v1393_v4, %v847_v27 }
 0x21b   :  { %v867_v17 = vmul.f32 %v958_v59, %v864_v28  ;;  %v868_v34 = vmul.f32 %v959_v63, %v865_v29  ;;  %v869_v35 = vmul.f32 %v960_v10, %v866_v30  ;;  %v851_v36 = vmul.f32 %v958_v59, %v848_v31 }
 0x21c   :  { %v852_v37 = vmul.f32 %v959_v63, %v849_v32  ;;  %v853_v38 = vmul.f32 %v960_v10, %v850_v33  ;;  %v884_v63 = vld [vmem:[%s1444_s3] sm:$0xf] }
 0x21d   :  { %v870_v39 = vmul.f32 %v867_v17, %v867_v17  ;;  %v871_v40 = vmul.f32 %v868_v34, %v868_v34  ;;  %v872_v41 = vmul.f32 %v869_v35, %v869_v35  ;;  %v854_v42 = vmul.f32 %v851_v36, %v851_v36 }
 0x21e   :  { %v855_v43 = vmul.f32 %v852_v37, %v852_v37  ;;  %v856_v44 = vmul.f32 %v853_v38, %v853_v38 }
 0x21f   :  { %v873_v45 = vsel %vm306_vm4, %v870_v39, 0.0  ;;  %v874_v46 = vsel %vm306_vm4, %v871_v40, 0.0  ;;  %v857_v47 = vsel %vm306_vm4, %v854_v42, 0.0  ;;  %v876_v50 = vsel %vm306_vm4, %v872_v41, 0.0 }
 0x220   :  { %v875_v48 = vadd.f32 %v874_v46, %v873_v45  ;;  %v858_v49 = vsel %vm306_vm4, %v855_v43, 0.0  ;;  %v860_v53 = vsel %vm306_vm4, %v856_v44, 0.0 }
 0x221   :  { %v859_v51 = vadd.f32 %v858_v49, %v857_v47 }
 0x222   :  { %v877_v52 = vadd.f32 %v876_v50, %v875_v48 }
 0x223   :  { %v861_v54 = vadd.f32 %v860_v53, %v859_v51 }
 0x224   :  { %878 = vadd.xlane.f32.xlu1 %v877_v52 }
 0x225   :  { %862 = vadd.xlane.f32.xlu0 %v861_v54 }
 0x2ad   :  { %v879_v55 = vpop.xlane.xlu1 %878 }
 0x2ae   :  { %v863_v56 = vpop.xlane.xlu0 %862 }
 0x2af   :  { %v880_v57 = vadd.f32 %v879_v55, %v863_v56 }
 0x2b1   :  { %v881_v59 = vmul.f32 0.001953125, %v880_v57 }
 0x2b3   :  { %v882_v60 = vadd.f32 1e-05, %v881_v59 }
 0x2b5   :  { %1167 = vrsqrt.f32 %v882_v60 }
 0x2c2   :  { %v1168_v0 = vpop.eup %1167 }
 0x2c3   :  { %v885_v3 = vmul.f32 %v1168_v0, %v884_v63 }
 0x2c5   :  { %891 = vperm.xlu0 %1166, %v885_v3   ;;  %v887_v5 = vmul.f32 %v885_v3, %v847_v27 }
 0x2c7   :  { %v888_v7 = vsub.f32 %v886_v2, %v887_v5 }
 0x2c9   :  { %899 = vperm.xlu1 %1165, %v888_v7  }
 0x340   :  { %v892_v8 = vpop.permute.xlu0 %891 }
 0x341   :  { %v894_v9 = vmul.f32 %v892_v8, %v1381_v58  ;;  %v895_v10 = vmul.f32 %v892_v8, %v1384_v61  ;;  %v896_v11 = vmul.f32 %v892_v8, %v1393_v4  ;;  %v914_v15 = vmul.f32 %v892_v8, %v1386_v62 }
 0x342   :  { %v915_v16 = vmul.f32 %v892_v8, %v1391_v1  ;;  %v916_v18 = vmul.f32 %v892_v8, %v1398_v12 }
 0x344   :  { %v900_v19 = vpop.permute.xlu1 %899 }
 0x345   :  { %v902_v20 = vadd.f32 %v900_v19, %v894_v9  ;;  %v903_v21 = vadd.f32 %v900_v19, %v895_v10  ;;  %v904_v22 = vadd.f32 %v900_v19, %v896_v11  ;;  %v917_v23 = vadd.f32 %v914_v15, %v900_v19 }
 0x346   :  { %v918_v13 = vadd.f32 %v915_v16, %v900_v19  ;;  %v919_v24 = vadd.f32 %v916_v18, %v900_v19 }
 0x347   :  { %v905_v14 = vmax.f32 %v902_v20, 0.0  ;;  %v906_v6 = vmax.f32 %v903_v21, 0.0  ;;  %v907_v58 = vmax.f32 %v904_v22, 0.0  ;;  %v920_v25 = vmax.f32 %v917_v23, 0.0 }
 0x348   :  { %v921_v61 = vmax.f32 %v918_v13, 0.0  ;;  %v922_v26 = vmax.f32 %v919_v24, 0.0 }
 0x349   :  { %v910_v4 = vcombine.low %v905_v14, %v906_v6  ;;  %913 = vst [vmem:[%s1446_s5 + $0x8] sm:$0xf] %v907_v58 }
 0x34a   :  { %v925_v62 = vcombine.low %v920_v25, %v921_v61  ;;  %962 = vst [vmem:[%s1446_s5 + $0x14] sm:$0xf] %v922_v26 }
 0x34b   :  { %912 = vst [vmem:[%s1446_s5] sm:$0xff] %v910_v4 }
 0x34c   :  { %961 = vst [vmem:[%s1446_s5 + $0xc] sm:$0xff] %v925_v62 }

</bundles_post_ra>
